<compile_context>
chip_gen: v7x
topology: tpu7x:2x2x1
jax: 0.10.0
libtpu: 0.0.40
codegen_flags: <defaults>
</compile_context>

<pallas_src>
import functools

import jax
import jax.numpy as jnp
from jax.experimental import pallas as pl
from jax.experimental.pallas import tpu as pltpu

_NEG_BIG = -1e30  # effectively -inf for padded vocab columns (f32-safe, no NaNs)
_MIB = 1024 * 1024


def _round_up(x, m):
    return -(-x // m) * m


@functools.lru_cache(maxsize=None)
def _vmem_capacity_bytes():
    """Per-core VMEM capacity (falls back to the v7x 64 MiB floor)."""
    try:
        cap = int(pltpu.get_tpu_info().vmem_capacity_bytes)
    except Exception:
        cap = 64 * _MIB
    return max(32 * _MIB, min(cap, 128 * _MIB))


def _resident_spec(block_shape, index_map):
    """Fetch-once block (constant index_map): single-buffer to halve VMEM footprint."""
    try:
        return pl.BlockSpec(block_shape, index_map, pipeline_mode=pl.Buffered(1))
    except Exception:  # older jax without pipeline_mode / Buffered
        return pl.BlockSpec(block_shape, index_map)


def _pick_tv(vp, target=2048):
    """Largest multiple of 128 that divides vp and is <= target."""
    n128 = vp // 128
    best = 1
    for d in range(1, n128 + 1):
        if n128 % d == 0 and d * 128 <= target:
            best = d
    return best * 128


# --------------------------------------------------------------------------- kernels
def _ctc_decoder_kernel(x_ref, w_ref, b_ref, o_ref):
    """Single vocab block: logits + fused stable log-softmax. All softmax math f32."""
    x_bf16 = x_ref[...].astype(jnp.bfloat16)                       # in-kernel cast (VPU, free)
    logits = jnp.dot(x_bf16, w_ref[...],
                     preferred_element_type=jnp.float32) + b_ref[...]
    m = jnp.max(logits, axis=-1, keepdims=True)
    shifted = logits - m
    lse = jnp.log(jnp.sum(jnp.exp(shifted), axis=-1, keepdims=True))
    o_ref[...] = (shifted - lse).astype(o_ref.dtype)


def _ctc_decoder_kernel_vtiled(x_ref, w_ref, b_ref, o_ref, m_ref, l_ref):
    """Vocab-tiled path: online logsumexp over the vocab grid axis.

    The full-width (TM, Vp) output slab is VMEM-resident across the vocab axis;
    raw logits are written per tile, and the lse is subtracted on the last tile.
    """
    j = pl.program_id(1)
    n_v = pl.num_programs(1)
    tv = w_ref.shape[1]

    @pl.when(j == 0)
    def _init():
        m_ref[...] = jnp.full(m_ref.shape, _NEG_BIG, dtype=m_ref.dtype)
        l_ref[...] = jnp.zeros(l_ref.shape, dtype=l_ref.dtype)

    x_bf16 = x_ref[...].astype(jnp.bfloat16)
    logits = jnp.dot(x_bf16, w_ref[...],
                     preferred_element_type=jnp.float32) + b_ref[...]

    col = pl.multiple_of(j * tv, 128)
    o_ref[:, pl.ds(col, tv)] = logits

    m_prev = m_ref[...]
    m_new = jnp.maximum(m_prev, jnp.max(logits, axis=-1, keepdims=True))
    l_ref[...] = l_ref[...] * jnp.exp(m_prev - m_new) + jnp.sum(
        jnp.exp(logits - m_new), axis=-1, keepdims=True)
    m_ref[...] = m_new

    @pl.when(j == n_v - 1)
    def _finalize():
        lse = m_ref[...] + jnp.log(l_ref[...])
        o_ref[...] = o_ref[...] - lse


# --------------------------------------------------------------------------- wrappers
def prepare_decoder_params(weight, bias):
    """One-time parameter prep: weight.T -> bf16, vocab padded to a multiple of 128.

    Cache the result across forward calls (do NOT redo this per step).
    weight: (vocab, in_features); bias: (vocab,). Returns (K, Vp) bf16, (1, Vp) f32.
    """
    vocab, _ = weight.shape
    vp = _round_up(vocab, 128)
    w = weight.T.astype(jnp.bfloat16)
    b = bias.astype(jnp.float32)
    if vp != vocab:
        w = jnp.pad(w, ((0, 0), (0, vp - vocab)))
        b = jnp.pad(b, (0, vp - vocab), constant_values=_NEG_BIG)
    return w, b.reshape(1, vp)


@functools.partial(jax.jit, static_argnames=("vocab", "block_rows", "vocab_block"))
def ctc_raw_decoder_prepared(x, w_prep, b_prep, *, vocab, block_rows=None,
                             vocab_block=None):
    """log_softmax(x @ weight.T + bias, axis=-1) with pre-prepared params.

    x: (..., in_features) f32; w_prep: (in_features, Vp) bf16; b_prep: (1, Vp) f32.
    Returns (..., vocab) f32 log-probabilities.
    """
    K = x.shape[-1]
    Vp = w_prep.shape[1]
    if w_prep.shape[0] != K:
        raise ValueError("w_prep/in_features mismatch")
    lead = x.shape[:-1]

    x2d = x.reshape(-1, K)                     # no cast, no pad: cheap view-reshape
    M = x2d.shape[0]
    if M == 0:                                 # empty-batch guard
        return jnp.zeros((*lead, vocab), jnp.float32)

    capacity = _vmem_capacity_bytes()
    budget = int(0.75 * capacity)

    weight_bytes = K * Vp * 2                  # single-buffered resident weight (bf16)
    bias_bytes = 8 * Vp * 4                    # (1, Vp) block, 8-sublane padded
    per_row_single = 2 * K * 4 + 2 * Vp * 4    # x (f32, 2 bufs) + out (f32, 2 bufs)
    tm_cap_single = max(0, (budget - weight_bytes - bias_bytes) // per_row_single)

    m_tile_need = min(64, _round_up(M, 8))
    use_vtiling = (vocab_block is not None) or (tm_cap_single < m_tile_need)

    if not use_vtiling:
        # ---------------- resident-weight path (typical CTC vocab) ----------------
        TM = min(tm_cap_single, 1024, _round_up(M, 8))
        if block_rows is not None:
            TM = min(TM, block_rows)
        TM = max(8, (TM // 8) * 8)

        vmem_need = weight_bytes + bias_bytes + TM * per_row_single
        vmem_limit = min(capacity, max(32 * _MIB, int(vmem_need * 1.2) + 2 * _MIB))

        out = pl.pallas_call(
            _ctc_decoder_kernel,
            out_shape=jax.ShapeDtypeStruct((M, Vp), jnp.float32),
            grid=(pl.cdiv(M, TM),),
            in_specs=[
                pl.BlockSpec((TM, K), lambda i: (i, 0)),            # pipelined rows
                _resident_spec((K, Vp), lambda i: (0, 0)),          # weight: fetched once
                _resident_spec((1, Vp), lambda i: (0, 0)),          # bias: fetched once
            ],
            out_specs=pl.BlockSpec((TM, Vp), lambda i: (i, 0)),
            compiler_params=pltpu.CompilerParams(
                dimension_semantics=("parallel",),                  # megacore on v7x
                vmem_limit_bytes=vmem_limit,
            ),
            cost_estimate=pl.CostEstimate(
                flops=2 * M * K * Vp,
                transcendentals=M * Vp,
                bytes_accessed=M * K * 4 + K * Vp * 2 + Vp * 4 + M * Vp * 4,
            ),
        )(x2d, w_prep, b_prep)
    else:
        # ------------- vocab-tiled path (large vocab / v7x 64 MiB VMEM) -----------
        if vocab_block is not None:
            TV = int(vocab_block)
            if TV % 128 != 0 or Vp % TV != 0:
                raise ValueError("vocab_block must be a multiple of 128 dividing "
                                 f"padded vocab {Vp}")
        else:
            TV = _pick_tv(Vp)
        n_v = Vp // TV

        fixed = 2 * K * TV * 2 + 2 * 8 * TV * 4 + 64 * 1024   # w/b tiles + slack
        per_row = 2 * K * 4 + 2 * Vp * 4                      # x bufs + resident out slab
        tm_cap = (budget - fixed) // per_row
        TM = min(max(tm_cap, 8), 512, _round_up(M, 8))
        if block_rows is not None:
            TM = min(TM, block_rows)
        TM = max(8, (TM // 8) * 8)

        vmem_need = fixed + TM * per_row + 4 * TM * 4
        vmem_limit = min(capacity, max(32 * _MIB, int(vmem_need * 1.2) + 2 * _MIB))

        out = pl.pallas_call(
            _ctc_decoder_kernel_vtiled,
            out_shape=jax.ShapeDtypeStruct((M, Vp), jnp.float32),
            grid=(pl.cdiv(M, TM), n_v),
            in_specs=[
                pl.BlockSpec((TM, K), lambda i, j: (i, 0)),   # constant over j: 1 fetch/row-tile
                pl.BlockSpec((K, TV), lambda i, j: (0, j)),   # streamed weight tiles
                pl.BlockSpec((1, TV), lambda i, j: (0, j)),
            ],
            out_specs=pl.BlockSpec((TM, Vp), lambda i, j: (i, 0)),  # resident across j
            scratch_shapes=[
                pltpu.VMEM((TM, 1), jnp.float32),             # running max
                pltpu.VMEM((TM, 1), jnp.float32),             # running sum
            ],
            compiler_params=pltpu.CompilerParams(
                dimension_semantics=("parallel", "arbitrary"),
                vmem_limit_bytes=vmem_limit,
            ),
            cost_estimate=pl.CostEstimate(
                flops=2 * M * K * Vp,
                transcendentals=M * Vp,
                bytes_accessed=(M * K * 4 + pl.cdiv(M, TM) * K * Vp * 2
                                + Vp * 4 + M * Vp * 4),
            ),
        )(x2d, w_prep, b_prep)

    if Vp != vocab:
        out = out[:, :vocab]          # no-op when vocab is already a multiple of 128
    return out.reshape(*lead, vocab)


def ctc_raw_decoder(x, weight, bias, **kwargs):
    """Drop-in forward: prep should be cached by the caller in steady state."""
    w_prep, b_prep = prepare_decoder_params(weight, bias)
    return ctc_raw_decoder_prepared(x, w_prep, b_prep, vocab=weight.shape[0], **kwargs)


if __name__ == "__main__":
    # Small shapes consistent with the module's forward: (batch, seq, in_features)
    batch, seq, in_features, vocab_size = 2, 8, 32, 16

    key = jax.random.PRNGKey(0)
    kx, kw, kb = jax.random.split(key, 3)

    x = jax.random.normal(kx, (batch, seq, in_features), dtype=jnp.float32)
    # Deterministic init mimicking nn.Linear defaults: U(-1/sqrt(K), 1/sqrt(K))
    bound = 1.0 / (in_features ** 0.5)
    weight = jax.random.uniform(
        kw, (vocab_size, in_features), minval=-bound, maxval=bound, dtype=jnp.float32)
    bias = jax.random.uniform(
        kb, (vocab_size,), minval=-bound, maxval=bound, dtype=jnp.float32)

    # One-time parameter prep (cached in real use), then the kernel call.
    w_prep, b_prep = prepare_decoder_params(weight, bias)
    out = ctc_raw_decoder_prepared(x, w_prep, b_prep, vocab=vocab_size)
    out = jax.block_until_ready(out)
    assert out.shape == (batch, seq, vocab_size)
    assert out.dtype == jnp.float32

    # Reference 1: full f32 math (kernel uses bf16 matmul operands -> bf16-level tol).
    ref_f32 = jax.nn.log_softmax(jnp.einsum("bsk,vk->bsv", x, weight) + bias, axis=-1)
    assert jnp.allclose(out, ref_f32, atol=2e-2, rtol=2e-2)

    # Reference 2: same bf16-quantized operands, f32 accumulation (tight check).
    ref_bf16 = jax.nn.log_softmax(
        jnp.einsum("bsk,vk->bsv",
                   x.astype(jnp.bfloat16).astype(jnp.float32),
                   weight.astype(jnp.bfloat16).astype(jnp.float32)) + bias, axis=-1)
    assert jnp.allclose(out, ref_bf16, atol=1e-3, rtol=1e-3)

    # Exercise the vocab-tiled online-logsumexp path (used for large vocab / v7x).
    vocab_big = 384
    kw2, kb2 = jax.random.split(kb)
    weight2 = jax.random.uniform(
        kw2, (vocab_big, in_features), minval=-bound, maxval=bound, dtype=jnp.float32)
    bias2 = jax.random.uniform(
        kb2, (vocab_big,), minval=-bound, maxval=bound, dtype=jnp.float32)
    w2_prep, b2_prep = prepare_decoder_params(weight2, bias2)
    out2 = ctc_raw_decoder_prepared(x, w2_prep, b2_prep, vocab=vocab_big,
                                    vocab_block=128)
    out2 = jax.block_until_ready(out2)
    assert out2.shape == (batch, seq, vocab_big)
    ref2 = jax.nn.log_softmax(
        jnp.einsum("bsk,vk->bsv",
                   x.astype(jnp.bfloat16).astype(jnp.float32),
                   weight2.astype(jnp.bfloat16).astype(jnp.float32)) + bias2, axis=-1)
    assert jnp.allclose(out2, ref2, atol=1e-3, rtol=1e-3)

    print("KERNEL_OK")
</pallas_src>

<mosaic_0001>
module attributes {stable_mosaic.version = 11 : i64} {
  func.func @_ctc_decoder_kernel(%arg0: i32, %arg1: memref<16x32xf32, #tpu.memory_space<vmem>>, %arg2: memref<32x128xbf16, #tpu.memory_space<vmem>>, %arg3: memref<1x128xf32, #tpu.memory_space<vmem>>, %arg4: memref<16x128xf32, #tpu.memory_space<vmem>>) attributes {dimension_semantics = [#tpu.dimension_semantics<parallel>], iteration_bounds = array<i64: 1>, scalar_prefetch = 0 : i64, scratch_operands = 0 : i64, tpu.core_type = #tpu.core_type<tc>, window_params = [{transform_indices = @transform_0, window_bounds = array<i64: 16, 32>}, {pipeline_mode = #tpu.pipeline_mode<synchronous>, transform_indices = @transform_1, window_bounds = array<i64: 32, 128>}, {pipeline_mode = #tpu.pipeline_mode<synchronous>, transform_indices = @transform_2, window_bounds = array<i64: 1, 128>}, {transform_indices = @transform_3, window_bounds = array<i64: 16, 128>}]} {
    %c0 = arith.constant 0 : index
    %c0_0 = arith.constant 0 : index
    %0 = vector.load %arg1[%c0, %c0_0] : memref<16x32xf32, #tpu.memory_space<vmem>>, vector<16x32xf32>
    %1 = arith.truncf %0 : vector<16x32xf32> to vector<16x32xbf16>
    %c0_1 = arith.constant 0 : index
    %c0_2 = arith.constant 0 : index
    %2 = vector.load %arg2[%c0_1, %c0_2] : memref<32x128xbf16, #tpu.memory_space<vmem>>, vector<32x128xbf16>
    %cst = arith.constant dense<0.000000e+00> : vector<16x128xf32>
    %3 = tpu.matmul %1, %2, %cst {dimension_numbers = #tpu.dot_dimension_numbers<[1], [0], [0], [1], [0, 0, 1, 1], [], []>} : vector<16x32xbf16>, vector<32x128xbf16>, vector<16x128xf32> -> vector<16x128xf32>
    %c0_3 = arith.constant 0 : index
    %c0_4 = arith.constant 0 : index
    %4 = vector.load %arg3[%c0_3, %c0_4] : memref<1x128xf32, #tpu.memory_space<vmem>>, vector<1x128xf32>
    %5 = vector.broadcast %4 : vector<1x128xf32> to vector<16x128xf32>
    %6 = arith.addf %3, %5 : vector<16x128xf32>
    %cst_5 = arith.constant dense<0xFF800000> : vector<16xf32>
    %7 = vector.multi_reduction <maximumf>, %6, %cst_5 [1] : vector<16x128xf32> to vector<16xf32>
    %8 = vector.shape_cast %7 : vector<16xf32> to vector<16x1xf32>
    %9 = vector.broadcast %8 : vector<16x1xf32> to vector<16x128xf32>
    %10 = arith.subf %6, %9 : vector<16x128xf32>
    %11 = math.exp %10 : vector<16x128xf32>
    %cst_6 = arith.constant dense<0.000000e+00> : vector<16xf32>
    %12 = vector.multi_reduction <add>, %11, %cst_6 [1] : vector<16x128xf32> to vector<16xf32>
    %13 = vector.shape_cast %12 : vector<16xf32> to vector<16x1xf32>
    %14 = math.log %13 : vector<16x1xf32>
    %15 = vector.broadcast %14 : vector<16x1xf32> to vector<16x128xf32>
    %16 = arith.subf %10, %15 : vector<16x128xf32>
    %c0_7 = arith.constant 0 : index
    %c0_8 = arith.constant 0 : index
    %17 = vector.load %arg4[%c0_7, %c0_8] : memref<16x128xf32, #tpu.memory_space<vmem>>, vector<16x128xf32>
    tpu.vector_store %arg4[%c0_7, %c0_8], %16 {strides = array<i32>} : memref<16x128xf32, #tpu.memory_space<vmem>>, vector<16x128xf32>,
    return
  }
  func.func @transform_0(%arg0: i32) -> (i32, i32) {
    %c0_i32 = arith.constant 0 : i32
    %c0_i32_0 = arith.constant 0 : i32
    return %arg0, %c0_i32 : i32, i32
  }
  func.func @transform_1(%arg0: i32) -> (i32, i32) {
    %c0_i32 = arith.constant 0 : i32
    %c0_i32_0 = arith.constant 0 : i32
    %c0_i32_1 = arith.constant 0 : i32
    return %c0_i32, %c0_i32_0 : i32, i32
  }
  func.func @transform_2(%arg0: i32) -> (i32, i32) {
    %c0_i32 = arith.constant 0 : i32
    %c0_i32_0 = arith.constant 0 : i32
    %c0_i32_1 = arith.constant 0 : i32
    return %c0_i32, %c0_i32_0 : i32, i32
  }
  func.func @transform_3(%arg0: i32) -> (i32, i32) {
    %c0_i32 = arith.constant 0 : i32
    %c0_i32_0 = arith.constant 0 : i32
    return %arg0, %c0_i32 : i32, i32
  }
}

</mosaic_0001>

<bundles_post_ra>
// kernel: ctc_raw_decoder_prepared.1
= control target key start
LH: loop header
LB: loop body
LE: loop exit
PB: predicated region body
PF: predicated region fallthrough
CT: control target
= control target key end

     0   :  { %8 = vsyncpa [#allocation3], 0  ;;  %s284_s0 = inlined_call_operand.hbm [shape: f32[16,32], index: 0, kind: input, shape index: {}]   ;;  %s285_s1 = inlined_call_operand.hbm [shape: bf16[32,128], index: 1, kind: input, shape index: {}]   ;;  %s286_s2 = inlined_call_operand.vmem [shape: f32[1,128], index: 2, kind: input, shape index: {}]   ;;  %s287_s3 = inlined_call_operand.vmem [shape: f32[16,128], index: 3, kind: output, shape index: {}]  }
   0x1   :  { %9 = vsyncpa [#allocation5], 0  ;;  %s223_s12 = smov [#allocation2]   ;;  %s175_s16 = scalar_lea.hbm %s284_s0, 256 }
   0x2   :  { %s15_s13 = sshll.u32 %s223_s12, 4  ;;  %p176_p0 = scmp.ne.s32.totalorder %s284_s0, %s175_s16  ;;  %s16_s13 = int_to_ptr.vmem [resolvable:$true] %s15_s13 }
   0x3   :  { %p179_p1 = scmp.lt.u32.totalorder %s175_s16, %s284_s0 }
   0x5   :  { %p181_p2 = pnand %p179_p1, %p176_p0 }
   0x7   :  { %184 = shalt.err (!%p181_p2)
}
   0x8   :  { %s185_s21 = scalar_lea.vmem %s16_s13, 256  ;;  %p190_p4 = scmp.lt.s32.totalorder %s16_s13, %s16_s13 }
   0x9   :  { %p186_p3 = scmp.ne.s32.totalorder %s16_s13, %s185_s21  ;;  %p191_p5 = scmp.lt.s32.totalorder %s185_s21, %s185_s21 }
   0xb   :  { %p192_p6 = por %p191_p5, %p190_p4 }
   0xd   :  { %p193_p7 = pnand %p192_p6, %p186_p3 }
   0xf   :  { %196 = shalt.err (!%p193_p7)
}
  0x10   :  { %s224_s22 = smov 128   ;;  %s225_s23 = smov 8  }
  0x11   :  { %21 = dma.hbm_to_vmem [thread:$0]  %s284_s0, 256, %s16_s13, [#allocation3], %s224_s22, %s224_s22, %s225_s23  }
  0x12   :  { %s226_s26 = smov [#allocation4]   ;;  %s197_s30 = scalar_lea.hbm %s285_s1, 256 }
  0x13   :  { %s27_s27 = sshll.u32 %s226_s26, 4  ;;  %p198_p8 = scmp.ne.s32.totalorder %s285_s1, %s197_s30  ;;  %s28_s27 = int_to_ptr.vmem [resolvable:$true] %s27_s27 }
  0x14   :  { %p201_p9 = scmp.lt.u32.totalorder %s197_s30, %s285_s1 }
  0x16   :  { %p203_p10 = pnand %p201_p9, %p198_p8 }
  0x18   :  { %206 = shalt.err (!%p203_p10)
}
  0x19   :  { %s207_s8 = scalar_lea.vmem %s28_s27, 256  ;;  %p212_p12 = scmp.lt.s32.totalorder %s28_s27, %s28_s27 }
  0x1a   :  { %p208_p11 = scmp.ne.s32.totalorder %s28_s27, %s207_s8  ;;  %p213_p13 = scmp.lt.s32.totalorder %s207_s8, %s207_s8 }
  0x1c   :  { %p214_p0 = por %p213_p13, %p212_p12 }
  0x1e   :  { %p215_p1 = pnand %p214_p0, %p208_p11 }
  0x20   :  { %218 = shalt.err (!%p215_p1)
}
  0x21   :  { %s227_s0 = smov 64   ;;  %s228_s9 = smov 4  }
  0x22   :  { %33 = dma.hbm_to_vmem [thread:$0]  %s285_s1, 256, %s28_s27, [#allocation5], %s227_s0, %s227_s0, %s228_s9  }
  0x23   :  { %219 = dma.done.wait [#allocation3], 256  }
  0x24   :  { %220 = vsyncadd [#allocation3], 4294967040 }
  0x25   :  { %221 = dma.done.wait [#allocation5], 256  }
  0x26   :  { %222 = vsyncadd [#allocation5], 4294967040  ;;  %v229_v0 = vmov 0.0   ;;  %vm230_vm0 = vmmov 0   ;;  %v165_v1 = vld [vmem:[#allocation4] sm:$0xff]   ;;  %v166_v2 = vld [vmem:[#allocation4 + $0x8] sm:$0xff]  }
  0x27   :  { %149 = vmatprep.subr.bf16.mxu0 %v229_v0  ;;  %153 = vmatprep.mubr.msk.bf16.mxu0 %vm230_vm0, %v229_v0  ;;  %v43_v3 = vld [vmem:[#allocation2] sm:$0xff]  ;;  %v44_v4 = vld [vmem:[#allocation2 + $0x8] sm:$0xff]  ;;  %vm69_vm1 = vcmask 261120  }
  0x28   :  { %150 = vmatpush3.bf16.msra.mxu0 %v165_v1  ;;  %v45_v5 = vpack.c.bf16 %v44_v4, %v43_v3  ;;  %v142_v6 = vld [vmem:[%s286_s2] ss:$0 sm:$0xff] }
  0x29   :  { %151 = vmatprep.subr.bf16.mxu0 %v229_v0 }
  0x2c   :  { %152 = vmatpush3.bf16.msra.mxu0 %v166_v2 }
  0x2f   :  { %154 = vmatmul.mubr.msk.bf16.vlgmr.msra.gmra.mrb[0].mxu0 %vm69_vm1, %v45_v5 }
 0x102   :  { %v107_v7 = vpop.f32.mrb[0].mxu0 }
 0x103   :  { %v108_v8 = vadd.f32 %v142_v6, %v107_v7  ;;  %v155_v9 = vpop.f32.mrb[1].mxu0 }
 0x104   :  { %v110_v10 = vpop.f32.mrb[2].mxu0 }
 0x105   :  { %114 = vmax.xlane.f32.xlu0 %v108_v8  ;;  %v156_v11 = vpop.f32.mrb[3].mxu0  ;;  %v111_v12 = vadd.f32 %v142_v6, %v110_v10 }
 0x109   :  { %116 = vmax.xlane.f32.xlu0 %v111_v12 }
 0x192   :  { %v115_v13 = vpop.xlane.xlu0 %114 }
 0x193   :  { %v118_v14 = vsub.f32 %v108_v8, %v115_v13 }
 0x195   :  { %v120_v15 = vmul.f32 1.442695, %v118_v14 }
 0x196   :  { %v117_v16 = vpop.xlane.xlu0 %116 }
 0x197   :  { %v119_v17 = vsub.f32 %v111_v12, %v117_v16  ;;  %167 = vpow2.f32 %v120_v15 }
 0x199   :  { %v122_v18 = vmul.f32 1.442695, %v119_v17 }
 0x19b   :  { %169 = vpow2.f32 %v122_v18 }
 0x1a1   :  { %v168_v19 = vpop.eup %167 }
 0x1a2   :  { %124 = vadd.xlane.f32.xlu1 %v168_v19 }
 0x1a5   :  { %v170_v20 = vpop.eup %169 }
 0x1a6   :  { %126 = vadd.xlane.f32.xlu1 %v170_v20 }
 0x22f   :  { %v125_v21 = vpop.xlane.xlu1 %124 }
 0x230   :  { %171 = vlog2.f32 %v125_v21 }
 0x233   :  { %v127_v22 = vpop.xlane.xlu1 %126 }
 0x234   :  { %173 = vlog2.f32 %v127_v22 }
 0x23a   :  { %v172_v23 = vpop.eup %171 }
 0x23b   :  { %v129_v24 = vmul.f32 0.6931472, %v172_v23 }
 0x23d   :  { %v132_v25 = vsub.f32 %v118_v14, %v129_v24 }
 0x23e   :  { %v174_v26 = vpop.eup %173 }
 0x23f   :  { %134 = vst [vmem:[%s287_s3] sm:$0xff] %v132_v25  ;;  %v131_v27 = vmul.f32 0.6931472, %v174_v26 }
 0x241   :  { %v133_v28 = vsub.f32 %v119_v17, %v131_v27 }
 0x243   :  { %135 = vst [vmem:[%s287_s3 + $0x8] sm:$0xff] %v133_v28 }
 0x244   :  { %140 = vsyncpa [#allocation3], 1 }
 0x245   :  { %141 = vsyncpa [#allocation5], 1 }

</bundles_post_ra>
